<compile_context>
chip_gen: v6e
topology: v6e:2x2x1
jax: 0.10.0
libtpu: 0.0.40
codegen_flags: <defaults>
</compile_context>

<pallas_src>
import functools

import jax
import jax.numpy as jnp
from jax import lax
from jax.experimental import pallas as pl
from jax.experimental.pallas import tpu as pltpu


def _hybrid_kernel(hidden_dim, embed_dim,
                   x_ref, theta_ref,
                   w1_ref, w2_ref, wa_ref, wb_ref, w3_ref, vec_ref,
                   out_ref):
    """Fused embedding MLP + hybrid log-ratio head for one batch tile.

    x/theta arrive in natural (TB, feat) layout; layer 1 contracts the feature
    axis of both operands so activations are feature-major (features, TB) and
    the batch lives on the lane axis.  MXU operands are bf16, accumulation and
    the elementwise path are f32.
    """
    H, E = hidden_dim, embed_dim

    xb = x_ref[...].astype(jnp.bfloat16)        # (TB, X)  VPU cast, no HBM cost
    tb = theta_ref[...].astype(jnp.bfloat16)    # (TB, T)

    # Packed per-feature column vectors (static, 8-aligned sublane slices).
    b1 = vec_ref[0:H, :]                        # (H, 1)
    b2 = vec_ref[H:H + E, :]                    # (E, 1)
    bh = vec_ref[H + E:2 * H + E, :]            # (H, 1)
    b3 = vec_ref[2 * H + E:3 * H + E, :]        # (H, 1)
    w4 = vec_ref[3 * H + E:4 * H + E, :]        # (H, 1)
    b4 = vec_ref[4 * H + E:4 * H + E + 1, :]    # (1, 1)

    # (out, in) . (TB, in) -> (out, TB): contract the feature axis of both.
    dn_bm = (((1,), (1,)), ((), ()))

    # ----- embedding(x): two-layer MLP (feature-major activations) -----
    h = lax.dot_general(w1_ref[...], xb, dn_bm,
                        preferred_element_type=jnp.float32) + b1           # (H, TB)
    h = jnp.maximum(h, 0.0)
    emb = jnp.dot(w2_ref[...], h.astype(jnp.bfloat16),
                  preferred_element_type=jnp.float32) + b2                 # (E, TB)

    # ----- hybrid.approx_unnormalized_log_p_y_given_x(emb, theta) -----
    # relu(W [emb; theta] + b) with W split into Wa / Wb (avoids a lane concat).
    z = (jnp.dot(wa_ref[...], emb.astype(jnp.bfloat16),
                 preferred_element_type=jnp.float32)
         + lax.dot_general(wb_ref[...], tb, dn_bm,
                           preferred_element_type=jnp.float32)
         + bh)
    z = jnp.maximum(z, 0.0)
    z = jnp.dot(w3_ref[...], z.astype(jnp.bfloat16),
                preferred_element_type=jnp.float32) + b3
    z = jnp.maximum(z, 0.0)                                                # (H, TB)

    # Final H -> 1 layer: f32 VPU broadcast-multiply + sublane (XLU) reduce;
    # result is a lane-dense (1, TB) row -> unmasked vst.
    out = jnp.sum(z * w4, axis=0, keepdims=True) + b4                      # (1, TB)
    out_ref[...] = out.astype(out_ref.dtype)


def _pick_batch_tile(batch):
    """Batch tile in [128, 2048].

    Floor 128: below that the lane axis produces masked stores and under-fills
    the MXU N dimension.  Cap 2048: per-tile working set is <1 KB per batch
    row, comfortably inside v5e's 16 MiB scoped VMEM default and v7x's 64 MiB
    physical VMEM.  Prefers >=2 grid steps so ("parallel",) can shard across
    v7x's two TensorCores.
    """
    for t in (2048, 1024, 512, 256, 128):
        if batch >= 2 * t:
            return t
    return 128


def hybrid_with_embedding_forward(theta, x, params, *, batch_tile=None):
    """theta: (B, T), x: (B, X) -> (B, 1) unnormalized log p."""
    B, X = x.shape
    B2, T = theta.shape
    assert B == B2
    (w1, b1, w2, b2, wa, wb, bh, w3, b3, w4, b4) = params
    H = w1.shape[0]
    E = w2.shape[0]
    assert H % 8 == 0 and E % 8 == 0, "packed-bias slicing needs 8-aligned dims"

    if batch_tile is None:
        batch_tile = _pick_batch_tile(B)
    # Pad the batch up to the tile instead of shrinking the tile below 128.
    B_pad = pl.cdiv(B, batch_tile) * batch_tile
    if B_pad != B:
        x = jnp.pad(x, ((0, B_pad - B), (0, 0)))
        theta = jnp.pad(theta, ((0, B_pad - B), (0, 0)))
    grid = (B_pad // batch_tile,)

    # bf16 MXU weights (tiny, O(H^2) bytes per call).  x/theta stay f32 in HBM
    # and are cast to bf16 inside the kernel: no extra wrapper-side HBM pass
    # over the only streams that scale with B.
    w1b = w1.astype(jnp.bfloat16)
    w2b = w2.astype(jnp.bfloat16)
    wab = wa.astype(jnp.bfloat16)
    wbb = wb.astype(jnp.bfloat16)
    w3b = w3.astype(jnp.bfloat16)

    # One f32 column buffer for the four biases + final-layer weight + b4
    # (sliced in-kernel at static 8-aligned offsets) instead of six streams.
    # TODO(synk): hoist this pack (and the weight casts) out of the per-call
    # path when the parameters are static across calls.
    vec_pack = jnp.concatenate(
        [b1, b2, bh, b3, w4.reshape(-1), b4.reshape(-1)],
        axis=0).astype(jnp.float32).reshape(-1, 1)            # (4H+E+1, 1)

    def batch_spec(feat):
        return pl.BlockSpec((batch_tile, feat), lambda i: (i, 0))

    def const_spec(shape):
        return pl.BlockSpec(shape, lambda i: (0, 0))

    in_specs = [
        batch_spec(X),               # x      (natural layout, no HBM transpose)
        batch_spec(T),               # theta
        const_spec(w1b.shape),       # (H, X)
        const_spec(w2b.shape),       # (E, H)
        const_spec(wab.shape),       # (H, E)
        const_spec(wbb.shape),       # (H, T)
        const_spec(w3b.shape),       # (H, H)
        const_spec(vec_pack.shape),  # (4H+E+1, 1)
    ]
    out_spec = pl.BlockSpec((1, batch_tile), lambda i: (0, i))

    flops = 2 * B_pad * (H * X + E * H + H * E + H * T + H * H + H)
    bytes_accessed = (4 * B_pad * (X + T + 1)
                      + 2 * (w1b.size + w2b.size + wab.size + wbb.size + w3b.size)
                      + 4 * vec_pack.size)

    out = pl.pallas_call(
        functools.partial(_hybrid_kernel, H, E),
        out_shape=jax.ShapeDtypeStruct((1, B_pad), jnp.float32),
        grid_spec=pltpu.PrefetchScalarGridSpec(
            num_scalar_prefetch=0,
            grid=grid,
            in_specs=in_specs,
            out_specs=out_spec,
        ),
        compiler_params=pltpu.CompilerParams(
            dimension_semantics=("parallel",)),
        cost_estimate=pl.CostEstimate(
            flops=flops, transcendentals=0, bytes_accessed=bytes_accessed),
    )(x, theta, w1b, w2b, wab, wbb, w3b, vec_pack)

    return out[0, :B].reshape(B, 1)


def init_params(key, x_dim, theta_dim, embed_dim, hidden_dim):
    """Synthetic parameters in torch nn.Linear (out, in) layout."""
    ks = jax.random.split(key, 11)
    s = 0.1
    w1 = s * jax.random.normal(ks[0], (hidden_dim, x_dim), jnp.float32)
    b1 = s * jax.random.normal(ks[1], (hidden_dim,), jnp.float32)
    w2 = s * jax.random.normal(ks[2], (embed_dim, hidden_dim), jnp.float32)
    b2 = s * jax.random.normal(ks[3], (embed_dim,), jnp.float32)
    wa = s * jax.random.normal(ks[4], (hidden_dim, embed_dim), jnp.float32)
    wb = s * jax.random.normal(ks[5], (hidden_dim, theta_dim), jnp.float32)
    bh = s * jax.random.normal(ks[6], (hidden_dim,), jnp.float32)
    w3 = s * jax.random.normal(ks[7], (hidden_dim, hidden_dim), jnp.float32)
    b3 = s * jax.random.normal(ks[8], (hidden_dim,), jnp.float32)
    w4 = s * jax.random.normal(ks[9], (1, hidden_dim), jnp.float32)
    b4 = s * jax.random.normal(ks[10], (1,), jnp.float32)
    return (w1, b1, w2, b2, wa, wb, bh, w3, b3, w4, b4)


def reference_forward(theta, x, params):
    """Pure-JAX f32 reference with torch nn.Linear semantics (y = x @ W.T + b)."""
    (w1, b1, w2, b2, wa, wb, bh, w3, b3, w4, b4) = params
    h = jnp.maximum(x @ w1.T + b1, 0.0)
    emb = h @ w2.T + b2
    z = jnp.maximum(emb @ wa.T + theta @ wb.T + bh, 0.0)
    z = jnp.maximum(z @ w3.T + b3, 0.0)
    return z @ w4.T + b4          # (B, 1)


if __name__ == "__main__":
    B, X_DIM, THETA_DIM, EMBED_DIM, HIDDEN_DIM = 512, 16, 4, 32, 64

    key = jax.random.PRNGKey(0)
    k_x, k_theta, k_params = jax.random.split(key, 3)

    x = jax.random.normal(k_x, (B, X_DIM), jnp.float32)               # observations
    theta = jax.random.normal(k_theta, (B, THETA_DIM), jnp.float32)   # parameters
    params = init_params(k_params, X_DIM, THETA_DIM, EMBED_DIM, HIDDEN_DIM)

    out = hybrid_with_embedding_forward(theta, x, params)  # tile=256, grid=(2,)
    out = jax.block_until_ready(out)

    ref = reference_forward(theta, x, params)
    assert out.shape == (B, 1)
    # bf16 MXU operands with f32 accumulation: loosened tolerance vs f32 ref.
    assert jnp.allclose(out, ref, atol=2e-2, rtol=2e-2), "mismatch vs reference"

    print("KERNEL_OK")
</pallas_src>

<mosaic_0001>
module attributes {stable_mosaic.version = 11 : i64} {
  func.func @_hybrid_kernel(%arg0: i32, %arg1: memref<256x16xf32, #tpu.memory_space<vmem>>, %arg2: memref<256x4xf32, #tpu.memory_space<vmem>>, %arg3: memref<64x16xbf16, #tpu.memory_space<vmem>>, %arg4: memref<32x64xbf16, #tpu.memory_space<vmem>>, %arg5: memref<64x32xbf16, #tpu.memory_space<vmem>>, %arg6: memref<64x4xbf16, #tpu.memory_space<vmem>>, %arg7: memref<64x64xbf16, #tpu.memory_space<vmem>>, %arg8: memref<289x1xf32, #tpu.memory_space<vmem>>, %arg9: memref<1x256xf32, #tpu.memory_space<vmem>>) attributes {dimension_semantics = [#tpu.dimension_semantics<parallel>], iteration_bounds = array<i64: 2>, scalar_prefetch = 0 : i64, scratch_operands = 0 : i64, tpu.core_type = #tpu.core_type<tc>, window_params = [{transform_indices = @transform_0, window_bounds = array<i64: 256, 16>}, {transform_indices = @transform_1, window_bounds = array<i64: 256, 4>}, {pipeline_mode = #tpu.pipeline_mode<synchronous>, transform_indices = @transform_2, window_bounds = array<i64: 64, 16>}, {pipeline_mode = #tpu.pipeline_mode<synchronous>, transform_indices = @transform_3, window_bounds = array<i64: 32, 64>}, {pipeline_mode = #tpu.pipeline_mode<synchronous>, transform_indices = @transform_4, window_bounds = array<i64: 64, 32>}, {pipeline_mode = #tpu.pipeline_mode<synchronous>, transform_indices = @transform_5, window_bounds = array<i64: 64, 4>}, {pipeline_mode = #tpu.pipeline_mode<synchronous>, transform_indices = @transform_6, window_bounds = array<i64: 64, 64>}, {pipeline_mode = #tpu.pipeline_mode<synchronous>, transform_indices = @transform_7, window_bounds = array<i64: 289, 1>}, {transform_indices = @transform_8, window_bounds = array<i64: 1, 256>}]} {
    %c0 = arith.constant 0 : index
    %c0_0 = arith.constant 0 : index
    %0 = vector.load %arg1[%c0, %c0_0] : memref<256x16xf32, #tpu.memory_space<vmem>>, vector<256x16xf32>
    %1 = arith.truncf %0 : vector<256x16xf32> to vector<256x16xbf16>
    %c0_1 = arith.constant 0 : index
    %c0_2 = arith.constant 0 : index
    %2 = vector.load %arg2[%c0_1, %c0_2] : memref<256x4xf32, #tpu.memory_space<vmem>>, vector<256x4xf32>
    %3 = arith.truncf %2 : vector<256x4xf32> to vector<256x4xbf16>
    %c0_3 = arith.constant 0 : index
    %c0_4 = arith.constant 0 : index
    %4 = vector.load %arg8[%c0_3, %c0_4] : memref<289x1xf32, #tpu.memory_space<vmem>>, vector<64x1xf32>
    %c64 = arith.constant 64 : index
    %c0_5 = arith.constant 0 : index
    %5 = vector.load %arg8[%c64, %c0_5] : memref<289x1xf32, #tpu.memory_space<vmem>>, vector<32x1xf32>
    %c96 = arith.constant 96 : index
    %c0_6 = arith.constant 0 : index
    %6 = vector.load %arg8[%c96, %c0_6] : memref<289x1xf32, #tpu.memory_space<vmem>>, vector<64x1xf32>
    %c160 = arith.constant 160 : index
    %c0_7 = arith.constant 0 : index
    %7 = vector.load %arg8[%c160, %c0_7] : memref<289x1xf32, #tpu.memory_space<vmem>>, vector<64x1xf32>
    %c224 = arith.constant 224 : index
    %c0_8 = arith.constant 0 : index
    %8 = vector.load %arg8[%c224, %c0_8] : memref<289x1xf32, #tpu.memory_space<vmem>>, vector<64x1xf32>
    %c288 = arith.constant 288 : index
    %c0_9 = arith.constant 0 : index
    %9 = vector.load %arg8[%c288, %c0_9] : memref<289x1xf32, #tpu.memory_space<vmem>>, vector<1x1xf32>
    %c0_10 = arith.constant 0 : index
    %c0_11 = arith.constant 0 : index
    %10 = vector.load %arg3[%c0_10, %c0_11] : memref<64x16xbf16, #tpu.memory_space<vmem>>, vector<64x16xbf16>
    %cst = arith.constant dense<0.000000e+00> : vector<64x256xf32>
    %11 = tpu.matmul %10, %1, %cst {dimension_numbers = #tpu.dot_dimension_numbers<[1], [1], [0], [0], [0, 0, 1, 0], [], []>} : vector<64x16xbf16>, vector<256x16xbf16>, vector<64x256xf32> -> vector<64x256xf32>
    %12 = vector.broadcast %4 : vector<64x1xf32> to vector<64x256xf32>
    %13 = arith.addf %11, %12 : vector<64x256xf32>
    %cst_12 = arith.constant 0.000000e+00 : f32
    %14 = vector.broadcast %cst_12 : f32 to vector<64x256xf32>
    %15 = arith.maximumf %13, %14 : vector<64x256xf32>
    %c0_13 = arith.constant 0 : index
    %c0_14 = arith.constant 0 : index
    %16 = vector.load %arg4[%c0_13, %c0_14] : memref<32x64xbf16, #tpu.memory_space<vmem>>, vector<32x64xbf16>
    %17 = arith.truncf %15 : vector<64x256xf32> to vector<64x256xbf16>
    %cst_15 = arith.constant dense<0.000000e+00> : vector<32x256xf32>
    %18 = tpu.matmul %16, %17, %cst_15 {dimension_numbers = #tpu.dot_dimension_numbers<[1], [0], [0], [1], [0, 0, 1, 1], [], []>} : vector<32x64xbf16>, vector<64x256xbf16>, vector<32x256xf32> -> vector<32x256xf32>
    %19 = vector.broadcast %5 : vector<32x1xf32> to vector<32x256xf32>
    %20 = arith.addf %18, %19 : vector<32x256xf32>
    %c0_16 = arith.constant 0 : index
    %c0_17 = arith.constant 0 : index
    %21 = vector.load %arg5[%c0_16, %c0_17] : memref<64x32xbf16, #tpu.memory_space<vmem>>, vector<64x32xbf16>
    %22 = arith.truncf %20 : vector<32x256xf32> to vector<32x256xbf16>
    %cst_18 = arith.constant dense<0.000000e+00> : vector<64x256xf32>
    %23 = tpu.matmul %21, %22, %cst_18 {dimension_numbers = #tpu.dot_dimension_numbers<[1], [0], [0], [1], [0, 0, 1, 1], [], []>} : vector<64x32xbf16>, vector<32x256xbf16>, vector<64x256xf32> -> vector<64x256xf32>
    %c0_19 = arith.constant 0 : index
    %c0_20 = arith.constant 0 : index
    %24 = vector.load %arg6[%c0_19, %c0_20] : memref<64x4xbf16, #tpu.memory_space<vmem>>, vector<64x4xbf16>
    %cst_21 = arith.constant dense<0.000000e+00> : vector<64x256xf32>
    %25 = tpu.matmul %24, %3, %cst_21 {dimension_numbers = #tpu.dot_dimension_numbers<[1], [1], [0], [0], [0, 0, 1, 0], [], []>} : vector<64x4xbf16>, vector<256x4xbf16>, vector<64x256xf32> -> vector<64x256xf32>
    %26 = arith.addf %23, %25 : vector<64x256xf32>
    %27 = vector.broadcast %6 : vector<64x1xf32> to vector<64x256xf32>
    %28 = arith.addf %26, %27 : vector<64x256xf32>
    %cst_22 = arith.constant 0.000000e+00 : f32
    %29 = vector.broadcast %cst_22 : f32 to vector<64x256xf32>
    %30 = arith.maximumf %28, %29 : vector<64x256xf32>
    %c0_23 = arith.constant 0 : index
    %c0_24 = arith.constant 0 : index
    %31 = vector.load %arg7[%c0_23, %c0_24] : memref<64x64xbf16, #tpu.memory_space<vmem>>, vector<64x64xbf16>
    %32 = arith.truncf %30 : vector<64x256xf32> to vector<64x256xbf16>
    %cst_25 = arith.constant dense<0.000000e+00> : vector<64x256xf32>
    %33 = tpu.matmul %31, %32, %cst_25 {dimension_numbers = #tpu.dot_dimension_numbers<[1], [0], [0], [1], [0, 0, 1, 1], [], []>} : vector<64x64xbf16>, vector<64x256xbf16>, vector<64x256xf32> -> vector<64x256xf32>
    %34 = vector.broadcast %7 : vector<64x1xf32> to vector<64x256xf32>
    %35 = arith.addf %33, %34 : vector<64x256xf32>
    %cst_26 = arith.constant 0.000000e+00 : f32
    %36 = vector.broadcast %cst_26 : f32 to vector<64x256xf32>
    %37 = arith.maximumf %35, %36 : vector<64x256xf32>
    %38 = vector.broadcast %8 : vector<64x1xf32> to vector<64x256xf32>
    %39 = arith.mulf %37, %38 : vector<64x256xf32>
    %cst_27 = arith.constant dense<0.000000e+00> : vector<256xf32>
    %40 = vector.multi_reduction <add>, %39, %cst_27 [0] : vector<64x256xf32> to vector<256xf32>
    %41 = vector.shape_cast %40 : vector<256xf32> to vector<1x256xf32>
    %42 = vector.broadcast %9 : vector<1x1xf32> to vector<1x256xf32>
    %43 = arith.addf %41, %42 : vector<1x256xf32>
    %c0_28 = arith.constant 0 : index
    %c0_29 = arith.constant 0 : index
    %44 = vector.load %arg9[%c0_28, %c0_29] : memref<1x256xf32, #tpu.memory_space<vmem>>, vector<1x256xf32>
    tpu.vector_store %arg9[%c0_28, %c0_29], %43 {strides = array<i32>} : memref<1x256xf32, #tpu.memory_space<vmem>>, vector<1x256xf32>,
    return
  }
  func.func @transform_0(%arg0: i32) -> (i32, i32) {
    %c0_i32 = arith.constant 0 : i32
    %c0_i32_0 = arith.constant 0 : i32
    return %arg0, %c0_i32 : i32, i32
  }
  func.func @transform_1(%arg0: i32) -> (i32, i32) {
    %c0_i32 = arith.constant 0 : i32
    %c0_i32_0 = arith.constant 0 : i32
    return %arg0, %c0_i32 : i32, i32
  }
  func.func @transform_2(%arg0: i32) -> (i32, i32) {
    %c0_i32 = arith.constant 0 : i32
    %c0_i32_0 = arith.constant 0 : i32
    %c0_i32_1 = arith.constant 0 : i32
    return %c0_i32, %c0_i32_0 : i32, i32
  }
  func.func @transform_3(%arg0: i32) -> (i32, i32) {
    %c0_i32 = arith.constant 0 : i32
    %c0_i32_0 = arith.constant 0 : i32
    %c0_i32_1 = arith.constant 0 : i32
    return %c0_i32, %c0_i32_0 : i32, i32
  }
  func.func @transform_4(%arg0: i32) -> (i32, i32) {
    %c0_i32 = arith.constant 0 : i32
    %c0_i32_0 = arith.constant 0 : i32
    %c0_i32_1 = arith.constant 0 : i32
    return %c0_i32, %c0_i32_0 : i32, i32
  }
  func.func @transform_5(%arg0: i32) -> (i32, i32) {
    %c0_i32 = arith.constant 0 : i32
    %c0_i32_0 = arith.constant 0 : i32
    %c0_i32_1 = arith.constant 0 : i32
    return %c0_i32, %c0_i32_0 : i32, i32
  }
  func.func @transform_6(%arg0: i32) -> (i32, i32) {
    %c0_i32 = arith.constant 0 : i32
    %c0_i32_0 = arith.constant 0 : i32
    %c0_i32_1 = arith.constant 0 : i32
    return %c0_i32, %c0_i32_0 : i32, i32
  }
  func.func @transform_7(%arg0: i32) -> (i32, i32) {
    %c0_i32 = arith.constant 0 : i32
    %c0_i32_0 = arith.constant 0 : i32
    %c0_i32_1 = arith.constant 0 : i32
    return %c0_i32, %c0_i32_0 : i32, i32
  }
  func.func @transform_8(%arg0: i32) -> (i32, i32) {
    %c0_i32 = arith.constant 0 : i32
    %c0_i32_0 = arith.constant 0 : i32
    return %c0_i32, %arg0 : i32, i32
  }
}

</mosaic_0001>

<bundles_post_ra>
// kernel: tpu_custom_call.1
= control target key start
LH: loop header
LB: loop body
LE: loop exit
PB: predicated region body
PF: predicated region fallthrough
CT: control target
= control target key end

     0   :  { %13 = vsyncpa [#allocation3], 0  ;;  %s2215_s0 = inlined_call_operand.vmem [shape: f32[512,16], index: 0, kind: input, shape index: {}]   ;;  %s2216_s1 = inlined_call_operand.vmem [shape: f32[512,4], index: 1, kind: input, shape index: {}]   ;;  %s2217_s2 = inlined_call_operand.vmem [shape: bf16[64,16], index: 2, kind: input, shape index: {}]   ;;  %s2218_s3 = inlined_call_operand.vmem [shape: bf16[32,64], index: 3, kind: input, shape index: {}]   ;;  %s2219_s4 = inlined_call_operand.vmem [shape: bf16[64,32], index: 4, kind: input, shape index: {}]   ;;  %s2220_s5 = inlined_call_operand.vmem [shape: bf16[64,4], index: 5, kind: input, shape index: {}]   ;;  %s2221_s6 = inlined_call_operand.vmem [shape: bf16[64,64], index: 6, kind: input, shape index: {}]   ;;  %s2222_s7 = inlined_call_operand.vmem [shape: f32[289,1], index: 7, kind: input, shape index: {}]   ;;  %s2223_s8 = inlined_call_operand.hbm [shape: f32[1,512], index: 8, kind: output, shape index: {}]  }
   0x1   :  { %15 = vsyncpa [#allocation3 + $0x1], 0  ;;  %s1804_s27 = smov 0   ;;  %s1806_s28 = smov 0  }
   0x2   :  { %s1808_s29 = smov 0   ;;  %s1810_s30 = smov 0  }
   0x3 LB: > { %s1509_s9 = sadd.s32 4294967295, %s1754_s30   ;;  %s1510_s10 = sadd.s32 4294967294, %s1754_s30   ;;  %s1754_s30 = sphi %s1810_s30, %s2229_s30   ;;  %s1750_s29 = sphi %s1808_s29, %s2228_s29   ;;  %s1746_s28 = sphi %s1806_s28, %s2227_s28   ;;  %s1742_s27 = sphi %s1804_s27, %s2226_s27  }
   0x4   : > { %s1827_s11 = sadd.s32 1, %s1754_s30   ;;  %s206_s12 = sadd.s32 1, %s1750_s29 }
   0x5   : > { %s203_s13 = ssub.s32 %s1754_s30, %s1827_s11  ;;  %p216_p0 = scmp.ne.s32.totalorder %s1750_s29, %s1746_s28 }
   0x6   : > { %p204_p1 = scmp.eq.s32.totalorder %s203_s13, 0  ;;  %p217_p2 = scmp.eq.s32.totalorder %s1509_s9, 1 }
   0x7   : > { %p222_p3 = scmp.ne.s32.totalorder %s1746_s28, %s1742_s27  ;;  %p223_p4 = scmp.eq.s32.totalorder %s1510_s10, 1 }
   0x8   : > { %s1837_s14 = scalar_select %p204_p1, %s1750_s29, %s206_s12  }
   0x9   : > { %p1839_p5 = por %p217_p2, %p216_p0  ;;  %p1843_p6 = por %p223_p4, %p222_p3 }
   0xa   : > { %p1513_p7 = scmp.ge.s32.totalorder %s1754_s30, 1  ;;  %p277_p8 = scmp.lt.s32.totalorder %s1754_s30, 3 }
   0xc   : > { %p278_p9 = pnand %p1513_p7, %p277_p8 }
   0xd   : > { %s1849_s17 = sshll.u32 (!%p278_p9), %s1509_s9, 5  ;;  %s313_s25 = sand.u32 (!%p278_p9), 1, %s1746_s28  }
   0xe   : > { %281 = sbr.rel (%p278_p9) target bundleno = 1058 (0x422), region = 52  ;;  %p317_p10 = scmp.lt.s32.totalorder (!%p278_p9), %s1849_s17, 63 }
   0xf   : > { %s1514_s26 = sshll.u32 (!%p278_p9), %s313_s25, 1  ;;  %s1437_s18 = scalar_lea.hbm (!%p278_p9), %s2223_s8, %s1849_s17 }
  0x10   : > { %s315_s9 = scalar_lea.vmem (!%p278_p9), [#allocation2], %s1514_s26  ;;  %s1425_s19 = scalar_lea.sflag (!%p278_p9), [#allocation3], %s313_s25 }
  0x11   : > { %s1758_s22 = smov (!%p278_p9), [#allocation2]  }
  0x13   : > { %v1855_v0 = vld [vmem:[%s2217_s2] sm:$0xff]   ;;  %vm531_vm0 = vcmask 130048   ;;  %s1858_s20 = scalar_select %p317_p10, %s1849_s17, 63  ;;  %v1756_v1 = vmov 0   ;;  %v432_v2 = vld [vmem:[%s2222_s7 + $0x30] sm:$0xff]  ;;  %v433_v3 = vld [vmem:[%s2222_s7 + $0x38] sm:$0xff] }
  0x14   : > { %1577 = vmatprep.mubr.msk.bf16.mxu0 %vm531_vm0, %v1855_v0  ;;  %1674 = vset.pattern.permute.xlu0 %v1756_v1  ;;  %v430_v4 = vld [vmem:[%s2222_s7 + $0x20] sm:$0xff]  ;;  %v431_v5 = vld [vmem:[%s2222_s7 + $0x28] sm:$0xff]  ;;  %v428_v15 = vld [vmem:[%s2222_s7 + $0x10] sm:$0xff]  ;;  %vm823_vm1 = vcmask 31744   ;;  %vm723_vm2 = vcmask 523264   ;;  %vm977_vm3 = vcmask 261120  }
  0x15   : > { %503 = vperm.xlu0 %1674, %v432_v2   ;;  %1675 = vset.pattern.permute.xlu1 %v1756_v1  ;;  %s1516_s23 = sshll.u32 %s1858_s20, 3  ;;  %v429_v19 = vld [vmem:[%s2222_s7 + $0x18] sm:$0xff]  ;;  %v426_v21 = vld [vmem:[%s2222_s7] sm:$0xff]  ;;  %v436_v26 = vld [vmem:[%s2222_s7 + $0x50] sm:$0xff] }
  0x16   : > { %762 = vmatprep.mubr.bf16.mxu1 %v1756_v1  ;;  %s1880_s13 = scalar_lea.vmem %s2215_s0, %s1516_s23  ;;  %493 = vperm.xlu1 %1675, %v430_v4   ;;  %v427_v27 = vld [vmem:[%s2222_s7 + $0x8] sm:$0xff]  ;;  %v437_v30 = vld [vmem:[%s2222_s7 + $0x58] sm:$0xff]  ;;  %v434_v34 = vld [vmem:[%s2222_s7 + $0x40] sm:$0xff]  ;;  %s2055_s24 = scalar_lea.vmem %s2216_s1, %s1516_s23 }
  0x17   : > { %v360_v6 = vld [vmem:[%s1880_s13 + $0xf0] sm:$0xff]  ;;  %v361_v7 = vld [vmem:[%s1880_s13 + $0xf8] sm:$0xff]  ;;  %v358_v11 = vld [vmem:[%s1880_s13 + $0xe0] sm:$0xff] }
  0x18   : > { %v344_v8 = vld [vmem:[%s1880_s13 + $0x70] sm:$0xff]  ;;  %v377_v9 = vpack.c.bf16 %v361_v7, %v360_v6  ;;  %v345_v10 = vld [vmem:[%s1880_s13 + $0x78] sm:$0xff]  ;;  %v359_v12 = vld [vmem:[%s1880_s13 + $0xe8] sm:$0xff] }
  0x19   : > { %508 = vperm.xlu0 %1674, %v433_v3   ;;  %v369_v13 = vpack.c.bf16 %v345_v10, %v344_v8  ;;  %v376_v14 = vpack.c.bf16 %v359_v12, %v358_v11  ;;  %v342_v16 = vld [vmem:[%s1880_s13 + $0x60] sm:$0xff]  ;;  %v343_v17 = vld [vmem:[%s1880_s13 + $0x68] sm:$0xff]  ;;  %v356_v22 = vld [vmem:[%s1880_s13 + $0xd0] sm:$0xff] }
  0x1a   : > { %1617 = vmatprep.subr.msk.bf16.mxu0 %vm531_vm0, %v377_v9  ;;  %498 = vperm.xlu1 %1675, %v431_v5   ;;  %v368_v20 = vpack.c.bf16 %v343_v17, %v342_v16  ;;  %v357_v23 = vld [vmem:[%s1880_s13 + $0xd8] sm:$0xff]  ;;  %v340_v28 = vld [vmem:[%s1880_s13 + $0x50] sm:$0xff]  ;;  %v338_v31 = vld [vmem:[%s1880_s13 + $0x40] sm:$0xff] }
  0x1b   : > { %v566_v18 = vsel %vm531_vm0, %v369_v13, 0  ;;  %v375_v25 = vpack.c.bf16 %v357_v23, %v356_v22  ;;  %v341_v29 = vld [vmem:[%s1880_s13 + $0x58] sm:$0xff]  ;;  %v339_v32 = vld [vmem:[%s1880_s13 + $0x48] sm:$0xff]  ;;  %v354_v35 = vld [vmem:[%s1880_s13 + $0xc0] sm:$0xff] }
  0x1c   : > { %1562 = vmatpush3.bf16.xpose.msra.mxu0 %v566_v18  ;;  %v563_v24 = vsel %vm531_vm0, %v368_v20, 0  ;;  %v367_v33 = vpack.c.bf16 %v341_v29, %v340_v28  ;;  %v355_v36 = vld [vmem:[%s1880_s13 + $0xc8] sm:$0xff]  ;;  %v366_v37 = vpack.c.bf16 %v339_v32, %v338_v31  ;;  %v444_v41 = vld [vmem:[%s2222_s7 + $0x90] sm:$0xff]  ;;  %v442_v43 = vld [vmem:[%s2222_s7 + $0x80] sm:$0xff] }
  0x1d   : > { %483 = vperm.xlu0 %1674, %v428_v15   ;;  %1618 = vmatprep.subr.msk.bf16.mxu0 %vm531_vm0, %v376_v14  ;;  %v435_v38 = vld [vmem:[%s2222_s7 + $0x48] sm:$0xff]  ;;  %v374_v40 = vpack.c.bf16 %v355_v36, %v354_v35  ;;  %v445_v44 = vld [vmem:[%s2222_s7 + $0x98] sm:$0xff]  ;;  %v352_v45 = vld [vmem:[%s1880_s13 + $0xb0] sm:$0xff] }
  0x1e   : > { %488 = vperm.xlu1 %1675, %v429_v19   ;;  %v560_v39 = vsel %vm531_vm0, %v367_v33, 0  ;;  %v557_v42 = vsel %vm531_vm0, %v366_v37, 0  ;;  %v353_v46 = vld [vmem:[%s1880_s13 + $0xb8] sm:$0xff]  ;;  %v443_v47 = vld [vmem:[%s2222_s7 + $0x88] sm:$0xff]  ;;  %v440_v48 = vld [vmem:[%s2222_s7 + $0x70] sm:$0xff] }
  0x1f   : > { %v336_v49 = vld [vmem:[%s1880_s13 + $0x30] sm:$0xff]  ;;  %v337_v50 = vld [vmem:[%s1880_s13 + $0x38] sm:$0xff]  ;;  %v373_v51 = vpack.c.bf16 %v353_v46, %v352_v45  ;;  %v438_v54 = vld [vmem:[%s2222_s7 + $0x60] sm:$0xff] }
  0x20   : > { %v441_v52 = vld [vmem:[%s2222_s7 + $0x78] sm:$0xff]  ;;  %v365_v53 = vpack.c.bf16 %v337_v50, %v336_v49  ;;  %v350_v55 = vld [vmem:[%s1880_s13 + $0xa0] sm:$0xff]  ;;  %v351_v56 = vld [vmem:[%s1880_s13 + $0xa8] sm:$0xff] }
  0x21   : > { %473 = vperm.xlu0 %1674, %v426_v21   ;;  %v439_v57 = vld [vmem:[%s2222_s7 + $0x68] sm:$0xff]  ;;  %v372_v59 = vpack.c.bf16 %v351_v56, %v350_v55  ;;  %v446_v60 = vld [vmem:[%s2222_s7 + $0xa0] sm:$0xff]  ;;  %v448_v3 = vld [vmem:[%s2222_s7 + $0xb0] sm:$0xff] }
  0x22   : > { %478 = vperm.xlu1 %1675, %v427_v27   ;;  %v554_v58 = vsel %vm531_vm0, %v365_v53, 0  ;;  %v334_v61 = vld [vmem:[%s1880_s13 + $0x20] sm:$0xff]  ;;  %v335_v62 = vld [vmem:[%s1880_s13 + $0x28] sm:$0xff]  ;;  %v348_v4 = vld [vmem:[%s1880_s13 + $0x90] sm:$0xff] }
  0x23   : > { %v447_v63 = vld [vmem:[%s2222_s7 + $0xa8] sm:$0xff]  ;;  %v364_v2 = vpack.c.bf16 %v335_v62, %v334_v61  ;;  %v349_v5 = vld [vmem:[%s1880_s13 + $0x98] sm:$0xff]  ;;  %v454_v9 = vld [vmem:[%s2222_s7 + $0xe0] sm:$0xff] }
  0x24   : > { %1564 = vmatpush3.bf16.xpose.msra.mxu0 %v563_v24  ;;  %v449_v6 = vld [vmem:[%s2222_s7 + $0xb8] sm:$0xff]  ;;  %v371_v8 = vpack.c.bf16 %v349_v5, %v348_v4  ;;  %v332_v10 = vld [vmem:[%s1880_s13 + $0x10] sm:$0xff]  ;;  %v455_v12 = vld [vmem:[%s2222_s7 + $0xe8] sm:$0xff] }
  0x25   : > { %705 = vperm.xlu0 %1674, %v436_v26   ;;  %1619 = vmatprep.subr.msk.bf16.mxu0 %vm531_vm0, %v375_v25  ;;  %v551_v7 = vsel %vm531_vm0, %v364_v2, 0  ;;  %v333_v11 = vld [vmem:[%s1880_s13 + $0x18] sm:$0xff]  ;;  %v450_v14 = vld [vmem:[%s2222_s7 + $0xc0] sm:$0xff]  ;;  %v347_v16 = vld [vmem:[%s1880_s13 + $0x88] sm:$0xff] }
  0x26   : > { %710 = vperm.xlu1 %1675, %v437_v30   ;;  %v363_v13 = vpack.c.bf16 %v333_v11, %v332_v10  ;;  %v346_v15 = vld [vmem:[%s1880_s13 + $0x80] sm:$0xff]  ;;  %v456_v17 = vld [vmem:[%s2222_s7 + $0xf0] sm:$0xff]  ;;  %v451_v20 = vld [vmem:[%s2222_s7 + $0xc8] sm:$0xff] }
  0x27   : > { %v370_v19 = vpack.c.bf16 %v347_v16, %v346_v15  ;;  %v330_v21 = vld [vmem:[%s1880_s13] sm:$0xff]  ;;  %v331_v22 = vld [vmem:[%s1880_s13 + $0x8] sm:$0xff]  ;;  %v457_v23 = vld [vmem:[%s2222_s7 + $0xf8] sm:$0xff]  ;;  %s1439_s13 = sshll.u32 %s315_s9, 4  ;;  %s1440_s13 = int_to_ptr.vmem [resolvable:$true] %s1439_s13 }
  0x28   : > { %v548_v18 = vsel %vm531_vm0, %v363_v13, 0  ;;  %v362_v24 = vpack.c.bf16 %v331_v22, %v330_v21  ;;  %v452_v25 = vld [vmem:[%s2222_s7 + $0xd0] sm:$0xff]  ;;  %v458_v26 = vld [vmem:[%s2222_s7 + $0x100] sm:$0xff]  ;;  %v453_v28 = vld [vmem:[%s2222_s7 + $0xd8] sm:$0xff]  ;;  %s1694_s21 = scalar_lea.vmem %s1440_s13, 32 }
  0x29   : > { %695 = vperm.xlu0 %1674, %v434_v34   ;;  %v459_v29 = vld [vmem:[%s2222_s7 + $0x108] sm:$0xff]  ;;  %v460_v30 = vld [vmem:[%s2222_s7 + $0x110] sm:$0xff]  ;;  %v461_v31 = vld [vmem:[%s2222_s7 + $0x118] sm:$0xff]  ;;  %p1695_p11 = scmp.ne.s32.totalorder %s1440_s13, %s1694_s21 }
  0x2a   : > { %700 = vperm.xlu1 %1675, %v435_v38   ;;  %v545_v27 = vsel %vm531_vm0, %v362_v24, 0  ;;  %v1677_v32 = vld [vmem:[%s2217_s2 + $0x8] sm:$0xff]   ;;  %v462_v33 = vld [vmem:[%s2222_s7 + $0x120] sm:$0x1]  ;;  %v1678_v34 = vld [vmem:[%s2217_s2 + $0x10] sm:$0xff]  }
  0x2b   : > { %v1679_v35 = vld [vmem:[%s2217_s2 + $0x18] sm:$0xff]   ;;  %p1696_p12 = pnand %p1695_p11, %p1839_p5 }
  0x2c   : > { %1566 = vmatpush3.bf16.xpose.msra.mxu0 %v560_v39 }
  0x2d   : > { %1095 = vperm.xlu0 %1674, %v444_v41   ;;  %1620 = vmatprep.subr.msk.bf16.mxu0 %vm531_vm0, %v374_v40  ;;  %p1697_p13 = pneg %p1696_p12 }
  0x2e   : > { %1100 = vperm.xlu1 %1675, %v445_v44  }
  0x31   : > { %1085 = vperm.xlu0 %1674, %v442_v43  }
  0x32   : > { %1090 = vperm.xlu1 %1675, %v443_v47  }
  0x34   : > { %1568 = vmatpush3.bf16.xpose.msra.mxu0 %v557_v42 }
  0x35   : > { %1075 = vperm.xlu0 %1674, %v440_v48   ;;  %1621 = vmatprep.subr.msk.bf16.mxu0 %vm531_vm0, %v373_v51 }
  0x36   : > { %1080 = vperm.xlu1 %1675, %v441_v52  }
  0x39   : > { %1065 = vperm.xlu0 %1674, %v438_v54  }
  0x3a   : > { %1070 = vperm.xlu1 %1675, %v439_v57  }
  0x3c   : > { %1570 = vmatpush3.bf16.xpose.msra.mxu0 %v554_v58 }
  0x3d   : > { %1153 = vperm.xlu0 %1674, %v446_v60   ;;  %1622 = vmatprep.subr.msk.bf16.mxu0 %vm531_vm0, %v372_v59 }
  0x3e   : > { %1158 = vperm.xlu1 %1675, %v447_v63  }
  0x41   : > { %1163 = vperm.xlu0 %1674, %v448_v3  }
  0x42   : > { %1168 = vperm.xlu1 %1675, %v449_v6  }
  0x44   : > { %1572 = vmatpush3.bf16.xpose.msra.mxu0 %v551_v7 }
  0x45   : > { %1314 = vperm.xlu0 %1674, %v454_v9   ;;  %1623 = vmatprep.subr.msk.bf16.mxu0 %vm531_vm0, %v371_v8 }
  0x46   : > { %1319 = vperm.xlu1 %1675, %v455_v12  }
  0x49   : > { %1173 = vperm.xlu0 %1674, %v450_v14  }
  0x4a   : > { %1324 = vperm.xlu1 %1675, %v456_v17  }
  0x4c   : > { %1574 = vmatpush3.bf16.xpose.msra.mxu0 %v548_v18 }
  0x4d   : > { %1178 = vperm.xlu0 %1674, %v451_v20   ;;  %1624 = vmatprep.subr.msk.bf16.mxu0 %vm531_vm0, %v370_v19 }
  0x4e   : > { %1329 = vperm.xlu1 %1675, %v457_v23  }
  0x51   : > { %1183 = vperm.xlu0 %1674, %v452_v25  }
  0x52   : > { %1334 = vperm.xlu1 %1675, %v458_v26  }
  0x54   : > { %1576 = vmatpush3.bf16.xpose.msra.mxu0 %v545_v27 }
  0x55   : > { %1188 = vperm.xlu0 %1674, %v453_v28  }
  0x56   : > { %1339 = vperm.xlu1 %1675, %v459_v29  }
  0x59   : > { %1344 = vperm.xlu0 %1674, %v460_v30  }
  0x5a   : > { %1349 = vperm.xlu1 %1675, %v461_v31  }
  0x5b   : > { %1578 = vmatmul.mubr.msk.bf16.vlgmr.msra.gmra.mxu0 %vm531_vm0, %v1855_v0 }
  0x5c   : > { %1579 = vmatprep.mubr.msk.bf16.mxu0 %vm531_vm0, %v1677_v32 }
  0x5d   : > { %1396 = vperm.xlu0 %1674, %v462_v33  }
  0x63   : > { %1580 = vmatmul.mubr.msk.bf16.gmra.mxu0 %vm531_vm0, %v1677_v32  ;;  %v408_v32 = vld [vmem:[%s2055_s24 + $0xf0] sm:$0xff] }
  0x64   : > { %1581 = vmatprep.mubr.msk.bf16.mxu0 %vm531_vm0, %v1678_v34 }
  0x6b   : > { %1582 = vmatmul.mubr.msk.bf16.gmra.mxu0 %vm531_vm0, %v1678_v34 }
  0x6c   : > { %1583 = vmatprep.mubr.msk.bf16.mxu0 %vm531_vm0, %v1679_v35 }
  0x73   : > { %1584 = vmatmul.mubr.msk.bf16.gmra.mxu0 %vm531_vm0, %v1679_v35  ;;  %v409_v35 = vld [vmem:[%s2055_s24 + $0xf8] sm:$0xff] }
  0x74   : > { %1022 = vmatprep.mubr.bf16.mxu0 %v1756_v1 }
  0x90   : > { %v504_v46 = vpop.permute.xlu0 %503 }
  0x91   : > { %v494_v44 = vpop.permute.xlu1 %493 }
  0x94   : > { %v509_v51 = vpop.permute.xlu0 %508 }
  0x95   : > { %v499_v49 = vpop.permute.xlu1 %498 }
  0x98   : > { %v484_v62 = vpop.permute.xlu0 %483 }
  0x99   : > { %v489_v57 = vpop.permute.xlu1 %488 }
  0x9c   : > { %v474_v19 = vpop.permute.xlu0 %473 }
  0x9d   : > { %v479_v12 = vpop.permute.xlu1 %478 }
 0x11b   : > { %v626_v0 = vpop.f32.mrf.mxu0 }
 0x11c   : > { %v627_v29 = vadd.f32 %v626_v0, %v474_v19 }
 0x11d   : > { %v628_v36 = vpop.f32.mrf.mxu0 }
 0x11e   : > { %v629_v22 = vadd.f32 %v628_v36, %v474_v19  ;;  %v392_v36 = vld [vmem:[%s2055_s24 + $0x70] sm:$0xff]  ;;  %v397_v19 = vld [vmem:[%s2055_s24 + $0x98] sm:$0xff] }
 0x11f   : > { %v630_v37 = vpop.f32.mrf.mxu0 }
 0x120   : > { %v631_v24 = vadd.f32 %v630_v37, %v479_v12  ;;  %v666_v31 = vmax.f32 %v629_v22, 0.0  ;;  %v665_v37 = vmax.f32 %v627_v29, 0.0  ;;  %v381_v22 = vld [vmem:[%s2055_s24 + $0x18] sm:$0xff]  ;;  %v379_v29 = vld [vmem:[%s2055_s24 + $0x8] sm:$0xff] }
 0x121   : > { %v632_v38 = vpop.f32.mrf.mxu0 }
 0x122   : > { %v633_v16 = vadd.f32 %v632_v38, %v479_v12  ;;  %v667_v33 = vmax.f32 %v631_v24, 0.0  ;;  %v393_v38 = vld [vmem:[%s2055_s24 + $0x78] sm:$0xff]  ;;  %v399_v12 = vld [vmem:[%s2055_s24 + $0xa8] sm:$0xff] }
 0x123   : > { %v636_v39 = vpop.f32.mrf.mxu0  ;;  %v417_v0 = vpack.c.bf16 %v393_v38, %v392_v36 }
 0x124   : > { %v637_v20 = vadd.f32 %v636_v39, %v484_v62  ;;  %v668_v27 = vmax.f32 %v633_v16, 0.0 }
 0x125   : > { %v638_v40 = vpop.f32.mrf.mxu0 }
 0x126   : > { %v639_v9 = vadd.f32 %v638_v40, %v484_v62  ;;  %v669_v30 = vmax.f32 %v637_v20, 0.0  ;;  %v686_v39 = vpack.c.bf16 %v668_v27, %v666_v31  ;;  %v425_v40 = vpack.c.bf16 %v409_v35, %v408_v32  ;;  %v386_v62 = vld [vmem:[%s2055_s24 + $0x40] sm:$0xff]  ;;  %v380_v20 = vld [vmem:[%s2055_s24 + $0x10] sm:$0xff]  ;;  %v1688_v35 = vld [vmem:[%s2220_s5 + $0x18] sm:$0xff]  }
 0x127   : > { %v640_v41 = vpop.f32.mrf.mxu0  ;;  %v378_v27 = vld [vmem:[%s2055_s24] sm:$0xff] }
 0x128   : > { %v641_v13 = vadd.f32 %v640_v41, %v489_v57  ;;  %v670_v23 = vmax.f32 %v639_v9, 0.0  ;;  %v685_v41 = vpack.c.bf16 %v667_v33, %v665_v37  ;;  %v1682_v32 = vld [vmem:[%s2220_s5] sm:$0xff]   ;;  %v1684_v33 = vld [vmem:[%s2220_s5 + $0x8] sm:$0xff]  }
 0x129   : > { %v642_v42 = vpop.f32.mrf.mxu0 }
 0x12a   : > { %v643_v3 = vadd.f32 %v642_v42, %v489_v57  ;;  %v671_v25 = vmax.f32 %v641_v13, 0.0  ;;  %v406_v42 = vld [vmem:[%s2055_s24 + $0xe0] sm:$0xff] }
 0x12b   : > { %v646_v43 = vpop.f32.mrf.mxu0  ;;  %v382_v13 = vld [vmem:[%s2055_s24 + $0x20] sm:$0xff] }
 0x12c   : > { %v647_v7 = vadd.f32 %v646_v43, %v494_v44  ;;  %v672_v17 = vmax.f32 %v643_v3, 0.0  ;;  %v687_v34 = vpack.c.bf16 %v671_v25, %v669_v30  ;;  %v407_v43 = vld [vmem:[%s2055_s24 + $0xe8] sm:$0xff]  ;;  %v400_v3 = vld [vmem:[%s2055_s24 + $0xb0] sm:$0xff]  ;;  %v394_v25 = vld [vmem:[%s2055_s24 + $0x80] sm:$0xff]  ;;  %v410_v30 = vpack.c.bf16 %v379_v29, %v378_v27 }
 0x12d   : > { %v648_v45 = vpop.f32.mrf.mxu0 }
 0x12e   : > { %v649_v60 = vadd.f32 %v648_v45, %v494_v44  ;;  %v673_v21 = vmax.f32 %v647_v7, 0.0  ;;  %v688_v28 = vpack.c.bf16 %v672_v17, %v670_v23  ;;  %v1680_v44 = vld [vmem:[%s2218_s3] sm:$0xff]   ;;  %v858_v45 = vsel %vm823_vm1, %v417_v0, 0  ;;  %v384_v7 = vld [vmem:[%s2055_s24 + $0x30] sm:$0xff] }
 0x12f   : > { %v650_v47 = vpop.f32.mrf.mxu0  ;;  %v411_v23 = vpack.c.bf16 %v381_v22, %v380_v20  ;;  %v837_v31 = vsel %vm823_vm1, %v410_v30, 0 }
 0x130   : > { %v651_v63 = vadd.f32 %v650_v47, %v499_v49  ;;  %v674_v10 = vmax.f32 %v649_v60, 0.0  ;;  %v390_v47 = vld [vmem:[%s2055_s24 + $0x60] sm:$0xff] }
 0x131   : > { %v652_v48 = vpop.f32.mrf.mxu0  ;;  %v840_v24 = vsel %vm823_vm1, %v411_v23, 0 }
 0x132   : > { %v653_v54 = vadd.f32 %v652_v48, %v499_v49  ;;  %v675_v14 = vmax.f32 %v651_v63, 0.0  ;;  %v391_v48 = vld [vmem:[%s2055_s24 + $0x68] sm:$0xff] }
 0x133   : > { %v656_v50 = vpop.f32.mrf.mxu0  ;;  %v416_v49 = vpack.c.bf16 %v391_v48, %v390_v47  ;;  %v387_v63 = vld [vmem:[%s2055_s24 + $0x48] sm:$0xff] }
 0x134   : > { %v657_v58 = vadd.f32 %v656_v50, %v504_v46  ;;  %v676_v4 = vmax.f32 %v653_v54, 0.0  ;;  %v689_v26 = vpack.c.bf16 %v675_v14, %v673_v21  ;;  %v404_v50 = vld [vmem:[%s2055_s24 + $0xd0] sm:$0xff] }
 0x135   : > { %v658_v52 = vpop.f32.mrf.mxu0 }
 0x136   : > { %v659_v55 = vadd.f32 %v658_v52, %v504_v46  ;;  %v677_v8 = vmax.f32 %v657_v58, 0.0  ;;  %v690_v18 = vpack.c.bf16 %v676_v4, %v674_v10  ;;  %v424_v46 = vpack.c.bf16 %v407_v43, %v406_v42  ;;  %v1681_v52 = vld [vmem:[%s2218_s3 + $0x8] sm:$0xff]   ;;  %v402_v58 = vld [vmem:[%s2055_s24 + $0xc0] sm:$0xff]  ;;  %v401_v4 = vld [vmem:[%s2055_s24 + $0xb8] sm:$0xff] }
 0x137   : > { %v660_v53 = vpop.f32.mrf.mxu0 }
 0x138   : > { %v661_v56 = vadd.f32 %v660_v53, %v509_v51  ;;  %v678_v5 = vmax.f32 %v659_v55, 0.0  ;;  %v855_v53 = vsel %vm823_vm1, %v416_v49, 0  ;;  %v388_v55 = vld [vmem:[%s2055_s24 + $0x50] sm:$0xff] }
 0x139   : > { %v662_v59 = vpop.f32.mrf.mxu0 }
 0x13a   : > { %v663_v61 = vadd.f32 %v662_v59, %v509_v51  ;;  %v679_v2 = vmax.f32 %v661_v56, 0.0  ;;  %v405_v51 = vld [vmem:[%s2055_s24 + $0xd8] sm:$0xff]  ;;  %v403_v59 = vld [vmem:[%s2055_s24 + $0xc8] sm:$0xff] }
 0x13b   : > { %v423_v54 = vpack.c.bf16 %v405_v51, %v404_v50  ;;  %v389_v56 = vld [vmem:[%s2055_s24 + $0x58] sm:$0xff] }
 0x13c   : > { %v680_v6 = vmax.f32 %v663_v61, 0.0  ;;  %v691_v15 = vpack.c.bf16 %v679_v2, %v677_v8  ;;  %v415_v57 = vpack.c.bf16 %v389_v56, %v388_v55  ;;  %v422_v61 = vpack.c.bf16 %v403_v59, %v402_v58  ;;  %v385_v8 = vld [vmem:[%s2055_s24 + $0x38] sm:$0xff]  ;;  %v1683_v59 = vld [vmem:[%s2219_s4] sm:$0xff]  }
 0x13d   : > { %v414_v2 = vpack.c.bf16 %v387_v63, %v386_v62  ;;  %v413_v9 = vpack.c.bf16 %v385_v8, %v384_v7  ;;  %v1689_v62 = vld [vmem:[%s2219_s4 + $0x18] sm:$0xff]  }
 0x13e   : > { %v692_v11 = vpack.c.bf16 %v680_v6, %v678_v5  ;;  %v852_v60 = vsel %vm823_vm1, %v415_v57, 0  ;;  %v421_v6 = vpack.c.bf16 %v401_v4, %v400_v3 }
 0x13f   : > { %v849_v5 = vsel %vm823_vm1, %v414_v2, 0  ;;  %v846_v10 = vsel %vm823_vm1, %v413_v9, 0 }
 0x140   : > { %738 = vmatprep.subr.bf16.mxu1 %v692_v11  ;;  %v398_v11 = vld [vmem:[%s2055_s24 + $0xa0] sm:$0xff] }
 0x141   : > { %739 = vmatpush1.bf16.msra.mxu1 %v691_v15  ;;  %v420_v14 = vpack.c.bf16 %v399_v12, %v398_v11  ;;  %v383_v15 = vld [vmem:[%s2055_s24 + $0x28] sm:$0xff] }
 0x142   : > { %740 = vmatprep.subr.bf16.mxu1 %v690_v18  ;;  %v412_v16 = vpack.c.bf16 %v383_v15, %v382_v13  ;;  %v396_v18 = vld [vmem:[%s2055_s24 + $0x90] sm:$0xff] }
 0x143   : > { %v419_v21 = vpack.c.bf16 %v397_v19, %v396_v18 }
 0x144   : > { %v843_v17 = vsel %vm823_vm1, %v412_v16, 0 }
 0x145   : > { %741 = vmatpush1.bf16.msra.mxu1 %v689_v26  ;;  %v395_v26 = vld [vmem:[%s2055_s24 + $0x88] sm:$0xff]  ;;  %s1698_s24 = sshll.u32 %s1758_s22, 4  ;;  %s1699_s24 = int_to_ptr.vmem [resolvable:$false] %s1698_s24 }
 0x146   : > { %742 = vmatprep.subr.bf16.mxu1 %v688_v28  ;;  %v418_v28 = vpack.c.bf16 %v395_v26, %v394_v25  ;;  %s1700_s20 = scalar_lea.vmem %s1699_s24, 64  ;;  %p1701_p0 = scmp.lt.s32.totalorder %s1440_s13, %s1699_s24 }
 0x147   : > { %p1702_p1 = scmp.lt.s32.totalorder %s1700_s20, %s1694_s21 }
 0x149   : > { %743 = vmatpush1.bf16.msra.mxu1 %v687_v34  ;;  %v1686_v34 = vld [vmem:[%s2220_s5 + $0x10] sm:$0xff]   ;;  %p1703_p2 = por %p1702_p1, %p1701_p0 }
 0x14a   : > { %744 = vmatprep.subr.bf16.mxu1 %v686_v39 }
 0x14b   : > { %p1704_p3 = pnand %p1703_p2, %p1697_p13 }
 0x14d   : > { %745 = vmatpush1.bf16.msra.mxu1 %v685_v41  ;;  %v706_v41 = vpop.permute.xlu0 %705 }
 0x14e   : > { %1625 = vmatprep.subr.msk.bf16.mxu1 %vm823_vm1, %v425_v40  ;;  %v711_v40 = vpop.permute.xlu1 %710 }
 0x150   : > { %1529 = vmatmul.mubr.msk.bf16.vlgmr.msra.gmra.mxu1 %vm723_vm2, %v1680_v44 }
 0x151   : > { %772 = vmatprep.mubr.bf16.mxu1 %v1756_v1  ;;  %1586 = vmatpush3.bf16.xpose.msra.mxu1 %v858_v45  ;;  %v696_v50 = vpop.permute.xlu0 %695 }
 0x152   : > { %1626 = vmatprep.subr.msk.bf16.mxu1 %vm823_vm1, %v424_v46  ;;  %v701_v44 = vpop.permute.xlu1 %700 }
 0x155   : > { %v1096_v26 = vpop.permute.xlu0 %1095 }
 0x158   : > { %1530 = vmatmul.mubr.msk.bf16.gmra.mxu1 %vm723_vm2, %v1681_v52 }
 0x159   : > { %1588 = vmatpush3.bf16.xpose.msra.mxu1 %v855_v53  ;;  %1601 = vmatprep.mubr.msk.bf16.mxu1 %vm823_vm1, %v1682_v32 }
 0x15a   : > { %1627 = vmatprep.subr.msk.bf16.mxu1 %vm823_vm1, %v423_v54 }
 0x161   : > { %1590 = vmatpush3.bf16.xpose.msra.mxu1 %v852_v60  ;;  %v1685_v60 = vld [vmem:[%s2219_s4 + $0x8] sm:$0xff]  }
 0x162   : > { %1628 = vmatprep.subr.msk.bf16.mxu1 %vm823_vm1, %v422_v61  ;;  %v1687_v61 = vld [vmem:[%s2219_s4 + $0x10] sm:$0xff]  }
 0x169   : > { %1592 = vmatpush3.bf16.xpose.msra.mxu1 %v849_v5 }
 0x16a   : > { %1629 = vmatprep.subr.msk.bf16.mxu1 %vm823_vm1, %v421_v6 }
 0x171   : > { %1594 = vmatpush3.bf16.xpose.msra.mxu1 %v846_v10 }
 0x172   : > { %1630 = vmatprep.subr.msk.bf16.mxu1 %vm823_vm1, %v420_v14 }
 0x179   : > { %1596 = vmatpush3.bf16.xpose.msra.mxu1 %v843_v17 }
 0x17a   : > { %1631 = vmatprep.subr.msk.bf16.mxu1 %vm823_vm1, %v419_v21 }
 0x181   : > { %1598 = vmatpush3.bf16.xpose.msra.mxu1 %v840_v24  ;;  %v1101_v24 = vpop.permute.xlu1 %1100 }
 0x182   : > { %1632 = vmatprep.subr.msk.bf16.mxu1 %vm823_vm1, %v418_v28 }
 0x185   : > { %v1091_v30 = vpop.permute.xlu1 %1090 }
 0x189   : > { %1600 = vmatpush3.bf16.xpose.msra.mxu1 %v837_v31 }
 0x190   : > { %1602 = vmatmul.mubr.msk.bf16.vlgmr.msra.gmra.mxu1 %vm823_vm1, %v1682_v32 }
 0x191   : > { %1603 = vmatprep.mubr.msk.bf16.mxu1 %vm823_vm1, %v1684_v33 }
 0x198   : > { %1604 = vmatmul.mubr.msk.bf16.gmra.mxu1 %vm823_vm1, %v1684_v33 }
 0x199   : > { %1605 = vmatprep.mubr.msk.bf16.mxu1 %vm823_vm1, %v1686_v34 }
 0x1a0   : > { %1606 = vmatmul.mubr.msk.bf16.gmra.mxu1 %vm823_vm1, %v1686_v34 }
 0x1a1   : > { %1607 = vmatprep.mubr.msk.bf16.mxu1 %vm823_vm1, %v1688_v35 }
 0x1a8   : > { %1608 = vmatmul.mubr.msk.bf16.gmra.mxu1 %vm823_vm1, %v1688_v35  ;;  %v1086_v35 = vpop.permute.xlu0 %1085 }
 0x1a9   : > { %1265 = vmatprep.mubr.bf16.mxu1 %v1756_v1 }
 0x210   : > { %v764_v36 = vpop.f32.mrf.mxu1 }
 0x211   : > { %v765_v57 = vadd.f32 %v764_v36, %v696_v50 }
 0x212   : > { %v766_v38 = vpop.f32.mrf.mxu1 }
 0x213   : > { %v767_v52 = vadd.f32 %v766_v38, %v696_v50 }
 0x214   : > { %v768_v39 = vpop.f32.mrf.mxu1 }
 0x215   : > { %v769_v54 = vadd.f32 %v768_v39, %v701_v44 }
 0x216   : > { %v770_v37 = vpop.f32.mrf.mxu1 }
 0x217   : > { %v771_v47 = vadd.f32 %v770_v37, %v701_v44  ;;  %v791_v58 = vpack.c.bf16 %v769_v54, %v765_v57 }
 0x218   : > { %v774_v0 = vpop.f32.mrf.mxu1 }
 0x219   : > { %v775_v51 = vadd.f32 %v774_v0, %v706_v41  ;;  %v792_v56 = vpack.c.bf16 %v771_v47, %v767_v52  ;;  %v1081_v47 = vpop.permute.xlu1 %1080 }
 0x21a   : > { %v776_v42 = vpop.f32.mrf.mxu1 }
 0x21b   : > { %v777_v48 = vadd.f32 %v776_v42, %v706_v41 }
 0x21c   : > { %v778_v43 = vpop.f32.mrf.mxu1 }
 0x21d   : > { %v779_v45 = vadd.f32 %v778_v43, %v711_v40 }
 0x21e   : > { %v780_v46 = vpop.f32.mrf.mxu1 }
 0x21f   : > { %v781_v49 = vadd.f32 %v780_v46, %v711_v40  ;;  %v793_v55 = vpack.c.bf16 %v779_v45, %v775_v51 }
 0x221   : > { %v794_v53 = vpack.c.bf16 %v781_v49, %v777_v48 }
 0x223   : > { %1002 = vmatprep.subr.bf16.mxu0 %v794_v53  ;;  %v1076_v53 = vpop.permute.xlu0 %1075 }
 0x224   : > { %1003 = vmatpush1.bf16.msra.mxu0 %v793_v55 }
 0x225   : > { %1004 = vmatprep.subr.bf16.mxu0 %v792_v56 }
 0x228   : > { %1005 = vmatpush1.bf16.msra.mxu0 %v791_v58 }
 0x22b   : > { %1543 = vmatmul.mubr.msk.bf16.vlgmr.msra.gmra.mxu0 %vm977_vm3, %v1683_v59 }
 0x22c   : > { %1032 = vmatprep.mubr.bf16.mxu0 %v1756_v1 }
 0x233   : > { %1544 = vmatmul.mubr.msk.bf16.gmra.mxu0 %vm977_vm3, %v1685_v60 }
 0x234   : > { %1042 = vmatprep.mubr.bf16.mxu0 %v1756_v1 }
 0x23b   : > { %1545 = vmatmul.mubr.msk.bf16.gmra.mxu0 %vm977_vm3, %v1687_v61 }
 0x23c   : > { %1052 = vmatprep.mubr.bf16.mxu0 %v1756_v1 }
 0x243   : > { %1546 = vmatmul.mubr.msk.bf16.gmra.mxu0 %vm977_vm3, %v1689_v62 }
 0x244   : > { %1255 = vmatprep.mubr.bf16.mxu0 %v1756_v1 }
 0x250   : > { %v2151_v63 = vpop.f32.mrf.mxu1 }
 0x252   : > { %v2153_v2 = vpop.f32.mrf.mxu1 }
 0x254   : > { %v2155_v3 = vpop.f32.mrf.mxu1 }
 0x256   : > { %v924_v4 = vpop.f32.mrf.mxu1 }
 0x258   : > { %v928_v5 = vpop.f32.mrf.mxu1 }
 0x25a   : > { %v930_v6 = vpop.f32.mrf.mxu1 }
 0x25c   : > { %v932_v7 = vpop.f32.mrf.mxu1 }
 0x25e   : > { %v934_v8 = vpop.f32.mrf.mxu1 }
 0x260   : > { %v938_v11 = vpop.f32.mrf.mxu1 }
 0x262   : > { %v940_v14 = vpop.f32.mrf.mxu1 }
 0x264   : > { %v942_v17 = vpop.f32.mrf.mxu1 }
 0x266   : > { %v944_v20 = vpop.f32.mrf.mxu1 }
 0x268   : > { %v948_v23 = vpop.f32.mrf.mxu1 }
 0x26a   : > { %v950_v28 = vpop.f32.mrf.mxu1 }
 0x26c   : > { %v952_v32 = vpop.f32.mrf.mxu1 }
 0x26e   : > { %v954_v41 = vpop.f32.mrf.mxu1 }
 0x2eb   : > { %v2157_v9 = vpop.f32.mrf.mxu0 }
 0x2ed   : > { %v1026_v10 = vpop.f32.mrf.mxu0 }
 0x2ef   : > { %v1028_v12 = vpop.f32.mrf.mxu0 }
 0x2f1   : > { %v1030_v13 = vpop.f32.mrf.mxu0 }
 0x2f2   : > { %v1031_v54 = vadd.f32 %v1030_v13, %v924_v4 }
 0x2f3   : > { %v1034_v15 = vpop.f32.mrf.mxu0 }
 0x2f4   : > { %v1035_v62 = vadd.f32 %v1034_v15, %v928_v5  ;;  %v1025_v5 = vadd.f32 %v2157_v9, %v2151_v63 }
 0x2f5   : > { %v1036_v16 = vpop.f32.mrf.mxu0 }
 0x2f6   : > { %v1037_v50 = vadd.f32 %v1036_v16, %v930_v6  ;;  %v1071_v6 = vpop.permute.xlu1 %1070  ;;  %v1029_v16 = vadd.f32 %v1028_v12, %v2155_v3  ;;  %v1107_v15 = vadd.f32 %v1076_v53, %v1035_v62 }
 0x2f7   : > { %v1038_v18 = vpop.f32.mrf.mxu0  ;;  %v1106_v13 = vadd.f32 %v1071_v6, %v1031_v54 }
 0x2f8   : > { %v1039_v55 = vadd.f32 %v1038_v18, %v932_v7  ;;  %v1105_v3 = vadd.f32 %v1071_v6, %v1029_v16 }
 0x2f9   : > { %v1040_v19 = vpop.f32.mrf.mxu0 }
 0x2fa   : > { %v1041_v40 = vadd.f32 %v1040_v19, %v934_v8  ;;  %v1108_v19 = vadd.f32 %v1076_v53, %v1037_v50  ;;  %v1121_v63 = vmax.f32 %v1105_v3, 0.0 }
 0x2fb   : > { %v1044_v21 = vpop.f32.mrf.mxu0 }
 0x2fc   : > { %v1045_v48 = vadd.f32 %v1044_v21, %v938_v11  ;;  %v1110_v58 = vadd.f32 %v1081_v47, %v1041_v40  ;;  %v1109_v21 = vadd.f32 %v1081_v47, %v1039_v55 }
 0x2fd   : > { %v1046_v22 = vpop.f32.mrf.mxu0 }
 0x2fe   : > { %v1047_v39 = vadd.f32 %v1046_v22, %v940_v14  ;;  %v1111_v8 = vadd.f32 %v1086_v35, %v1045_v48  ;;  %v1126_v18 = vmax.f32 %v1110_v58, 0.0  ;;  %v1125_v12 = vmax.f32 %v1109_v21, 0.0 }
 0x2ff   : > { %v1048_v25 = vpop.f32.mrf.mxu0 }
 0x300   : > { %v1049_v0 = vadd.f32 %v1048_v25, %v942_v17  ;;  %v1112_v51 = vadd.f32 %v1086_v35, %v1047_v39  ;;  %v1027_v17 = vadd.f32 %v1026_v10, %v2153_v2  ;;  %v1127_v2 = vmax.f32 %v1111_v8, 0.0  ;;  %v1691_v35 = vld [vmem:[%s2221_s6 + $0x8] sm:$0xff]  }
 0x301   : > { %v1050_v27 = vpop.f32.mrf.mxu0 }
 0x302   : > { %v1051_v33 = vadd.f32 %v1050_v27, %v944_v20  ;;  %v1113_v56 = vadd.f32 %v1091_v30, %v1049_v0  ;;  %v1128_v11 = vmax.f32 %v1112_v51, 0.0 }
 0x303   : > { %v1054_v29 = vpop.f32.mrf.mxu0 }
 0x304   : > { %v1055_v36 = vadd.f32 %v1054_v29, %v948_v23  ;;  %v1114_v43 = vadd.f32 %v1091_v30, %v1051_v33  ;;  %v1129_v4 = vmax.f32 %v1113_v56, 0.0  ;;  %v1066_v23 = vpop.permute.xlu0 %1065  ;;  %v1123_v29 = vmax.f32 %v1107_v15, 0.0 }
 0x305   : > { %v1056_v31 = vpop.f32.mrf.mxu0  ;;  %v1104_v10 = vadd.f32 %v1066_v23, %v1027_v17 }
 0x306   : > { %v1057_v34 = vadd.f32 %v1056_v31, %v950_v28  ;;  %v1115_v49 = vadd.f32 %v1096_v26, %v1055_v36  ;;  %v1130_v59 = vmax.f32 %v1114_v43, 0.0  ;;  %v1147_v25 = vpack.c.bf16 %v1129_v4, %v1127_v2  ;;  %v1692_v36 = vld [vmem:[%s2221_s6 + $0x10] sm:$0xff]  }
 0x307   : > { %v1058_v38 = vpop.f32.mrf.mxu0  ;;  %v1103_v28 = vadd.f32 %v1066_v23, %v1025_v5  ;;  %v1120_v30 = vmax.f32 %v1104_v10, 0.0  ;;  %v1145_v9 = vpack.c.bf16 %v1125_v12, %v1123_v29 }
 0x308   : > { %v1059_v37 = vadd.f32 %v1058_v38, %v952_v32  ;;  %v1116_v44 = vadd.f32 %v1096_v26, %v1057_v34  ;;  %v1131_v14 = vmax.f32 %v1115_v49, 0.0  ;;  %v1148_v22 = vpack.c.bf16 %v1130_v59, %v1128_v11  ;;  %v1690_v34 = vld [vmem:[%s2221_s6] sm:$0xff]   ;;  %v1693_v38 = vld [vmem:[%s2221_s6 + $0x18] sm:$0xff]   ;;  %v1154_v39 = vpop.permute.xlu0 %1153 }
 0x309   : > { %v1060_v42 = vpop.f32.mrf.mxu0  ;;  %v1122_v26 = vmax.f32 %v1106_v13, 0.0  ;;  %v1119_v32 = vmax.f32 %v1103_v28, 0.0 }
 0x30a   : > { %v1117_v45 = vadd.f32 %v1101_v24, %v1059_v37  ;;  %v1061_v46 = vadd.f32 %v1060_v42, %v954_v41  ;;  %v1132_v60 = vmax.f32 %v1116_v44, 0.0  ;;  %v1159_v37 = vpop.permute.xlu1 %1158 }
 0x30b   : > { %v1144_v31 = vpack.c.bf16 %v1122_v26, %v1120_v30  ;;  %v1143_v33 = vpack.c.bf16 %v1121_v63, %v1119_v32 }
 0x30c   : > { %v1118_v52 = vadd.f32 %v1101_v24, %v1061_v46  ;;  %v1133_v57 = vmax.f32 %v1117_v45, 0.0  ;;  %v1124_v24 = vmax.f32 %v1108_v19, 0.0  ;;  %v1164_v40 = vpop.permute.xlu0 %1163 }
 0x30e   : > { %v1134_v61 = vmax.f32 %v1118_v52, 0.0  ;;  %v1149_v7 = vpack.c.bf16 %v1133_v57, %v1131_v14  ;;  %v1146_v27 = vpack.c.bf16 %v1126_v18, %v1124_v24  ;;  %v1169_v0 = vpop.permute.xlu1 %1168 }
 0x310   : > { %v1150_v20 = vpack.c.bf16 %v1134_v61, %v1132_v60  ;;  %v1315_v41 = vpop.permute.xlu0 %1314 }
 0x312   : > { %1231 = vmatprep.subr.bf16.mxu0 %v1150_v20  ;;  %1609 = vmatprep.subr.bf16.mxu1 %v1150_v20  ;;  %v1320_v42 = vpop.permute.xlu1 %1319 }
 0x313   : > { %1232 = vmatpush1.bf16.msra.mxu0 %v1149_v7  ;;  %1613 = vmatpush1.bf16.msra.mxu1 %v1149_v7 }
 0x314   : > { %1233 = vmatprep.subr.bf16.mxu0 %v1148_v22  ;;  %1610 = vmatprep.subr.bf16.mxu1 %v1148_v22  ;;  %v1174_v43 = vpop.permute.xlu0 %1173 }
 0x316   : > { %v1325_v44 = vpop.permute.xlu1 %1324 }
 0x317   : > { %1234 = vmatpush1.bf16.msra.mxu0 %v1147_v25  ;;  %1614 = vmatpush1.bf16.msra.mxu1 %v1147_v25 }
 0x318   : > { %1235 = vmatprep.subr.bf16.mxu0 %v1146_v27  ;;  %1611 = vmatprep.subr.bf16.mxu1 %v1146_v27  ;;  %v1179_v47 = vpop.permute.xlu0 %1178 }
 0x31a   : > { %v1330_v54 = vpop.permute.xlu1 %1329 }
 0x31b   : > { %1236 = vmatpush1.bf16.msra.mxu0 %v1145_v9  ;;  %1615 = vmatpush1.bf16.msra.mxu1 %v1145_v9 }
 0x31c   : > { %1237 = vmatprep.subr.bf16.mxu0 %v1144_v31  ;;  %1612 = vmatprep.subr.bf16.mxu1 %v1144_v31  ;;  %v1184_v14 = vpop.permute.xlu0 %1183 }
 0x31e   : > { %v1335_v15 = vpop.permute.xlu1 %1334 }
 0x31f   : > { %1238 = vmatpush1.bf16.msra.mxu0 %v1143_v33  ;;  %1616 = vmatpush1.bf16.msra.mxu1 %v1143_v33 }
 0x320   : > { %v1189_v27 = vpop.permute.xlu0 %1188 }
 0x322   : > { %1551 = vmatmul.mubr.msk.bf16.vlgmr.msra.gmra.mxu0 %vm723_vm2, %v1690_v34  ;;  %1552 = vmatmul.mubr.msk.bf16.vlgmr.msra.gmra.mxu1 %vm723_vm2, %v1691_v35 }
 0x323   : > { %1275 = vmatprep.mubr.bf16.mxu1 %v1756_v1 }
 0x32a   : > { %1553 = vmatmul.mubr.msk.bf16.gmra.mxu1 %vm723_vm2, %v1692_v36 }
 0x32b   : > { %1285 = vmatprep.mubr.bf16.mxu1 %v1756_v1 }
 0x332   : > { %1554 = vmatmul.mubr.msk.bf16.gmra.mxu1 %vm723_vm2, %v1693_v38 }
 0x3e2   : > { %v1257_v45 = vpop.f32.mrf.mxu0  ;;  %v1267_v46 = vpop.f32.mrf.mxu1 }
 0x3e3   : > { %v1258_v48 = vadd.f32 %v1257_v45, %v1154_v39  ;;  %v1268_v51 = vadd.f32 %v1267_v46, %v1164_v40  ;;  %v1345_v46 = vpop.permute.xlu0 %1344 }
 0x3e4   : > { %v1259_v49 = vpop.f32.mrf.mxu0  ;;  %v1269_v1 = vpop.f32.mrf.mxu1 }
 0x3e5   : > { %v1260_v50 = vadd.f32 %v1259_v49, %v1154_v39  ;;  %v1270_v55 = vadd.f32 %v1269_v1, %v1164_v40  ;;  %v1296_v56 = vmax.f32 %v1258_v48, 0.0  ;;  %v1300_v17 = vmax.f32 %v1268_v51, 0.0  ;;  %v1340_v40 = vpop.permute.xlu1 %1339 }
 0x3e6   : > { %v1261_v52 = vpop.f32.mrf.mxu0  ;;  %v1271_v53 = vpop.f32.mrf.mxu1 }
 0x3e7   : > { %v1262_v57 = vadd.f32 %v1261_v52, %v1159_v37  ;;  %v1272_v58 = vadd.f32 %v1271_v53, %v1169_v0  ;;  %v1297_v61 = vmax.f32 %v1260_v50, 0.0  ;;  %v1301_v20 = vmax.f32 %v1270_v55, 0.0 }
 0x3e8   : > { %v1263_v59 = vpop.f32.mrf.mxu0  ;;  %v1273_v60 = vpop.f32.mrf.mxu1  ;;  %v1352_v21 = vmul.f32 %v1315_v41, %v1296_v56  ;;  %v1356_v2 = vmul.f32 %v1325_v44, %v1300_v17 }
 0x3e9   : > { %v1264_v62 = vadd.f32 %v1263_v59, %v1159_v37  ;;  %v1274_v8 = vadd.f32 %v1273_v60, %v1169_v0  ;;  %v1298_v19 = vmax.f32 %v1262_v57, 0.0  ;;  %v1302_v7 = vmax.f32 %v1272_v58, 0.0  ;;  %v1350_v57 = vpop.permute.xlu1 %1349 }
 0x3ea   : > { %v1277_v11 = vpop.f32.mrf.mxu1  ;;  %v1353_v18 = vmul.f32 %v1315_v41, %v1297_v61  ;;  %v1357_v3 = vmul.f32 %v1325_v44, %v1301_v20 }
 0x3eb   : > { %v1299_v6 = vmax.f32 %v1264_v62, 0.0  ;;  %v1278_v16 = vadd.f32 %v1277_v11, %v1174_v43  ;;  %v1354_v4 = vmul.f32 %v1320_v42, %v1298_v19  ;;  %v1303_v23 = vmax.f32 %v1274_v8, 0.0 }
 0x3ec   : > { %v1279_v13 = vpop.f32.mrf.mxu1  ;;  %v1358_v28 = vmul.f32 %v1330_v54, %v1302_v7  ;;  %v1757_v7 = vmov 1966171168  }
 0x3ed   : > { %v1355_v22 = vmul.f32 %v1320_v42, %v1299_v6  ;;  %v1280_v5 = vadd.f32 %v1279_v13, %v1174_v43  ;;  %v1368_v10 = vadd.f32 %v1354_v4, %v1352_v21  ;;  %v1304_v25 = vmax.f32 %v1278_v16, 0.0 }
 0x3ee   : > { %v1281_v24 = vpop.f32.mrf.mxu1  ;;  %v1359_v9 = vmul.f32 %v1330_v54, %v1303_v23  ;;  %v1405_v13 = vunpack.c.l.s4 %v1757_v7 }
 0x3ef   : > { %v1381_v12 = vadd.f32 %v1355_v22, %v1353_v18  ;;  %v1282_v26 = vadd.f32 %v1281_v24, %v1179_v47  ;;  %v1369_v29 = vadd.f32 %v1368_v10, %v1356_v2  ;;  %v1305_v30 = vmax.f32 %v1280_v5, 0.0 }
 0x3f0   : > { %v1283_v63 = vpop.f32.mrf.mxu1  ;;  %v1360_v38 = vmul.f32 %v1335_v15, %v1304_v25  ;;  %v1407_v18 = vlaneseq  ;;  %v1406_v2 = vunpack.c.0.s8 %v1405_v13 }
 0x3f1   : > { %v1382_v31 = vadd.f32 %v1381_v12, %v1357_v3  ;;  %v1306_v32 = vmax.f32 %v1282_v26, 0.0  ;;  %v1284_v33 = vadd.f32 %v1283_v63, %v1179_v47  ;;  %v1370_v34 = vadd.f32 %v1369_v29, %v1358_v28  ;;  %v1397_v3 = vpop.permute.xlu0 %1396 }
 0x3f2   : > { %v1287_v35 = vpop.f32.mrf.mxu1  ;;  %v1361_v0 = vmul.f32 %v1335_v15, %v1305_v30  ;;  %v1408_v10 = vshrl.u32 %v1407_v18, 7  ;;  %vm1421_vm4 = vcmp.lt.s32.totalorder %v1407_v18, 256 }
 0x3f3   : > { %v1383_v36 = vadd.f32 %v1382_v31, %v1359_v9  ;;  %v1307_v39 = vmax.f32 %v1284_v33, 0.0  ;;  %v1288_v37 = vadd.f32 %v1287_v35, %v1184_v14  ;;  %v1371_v42 = vadd.f32 %v1370_v34, %v1360_v38 }
 0x3f4   : > { %v1289_v41 = vpop.f32.mrf.mxu1  ;;  %v1362_v43 = vmul.f32 %v1340_v40, %v1306_v32  ;;  %v1409_v26 = vsub.s32 %v1406_v2, %v1408_v10 }
 0x3f5   : > { %v1308_v44 = vmax.f32 %v1288_v37, 0.0  ;;  %v1290_v45 = vadd.f32 %v1289_v41, %v1184_v14  ;;  %v1384_v48 = vadd.f32 %v1383_v36, %v1361_v0  ;;  %v1363_v1 = vmul.f32 %v1340_v40, %v1307_v39 }
 0x3f6   : > { %v1291_v49 = vpop.f32.mrf.mxu1  ;;  %v1372_v53 = vadd.f32 %v1371_v42, %v1362_v43 }
 0x3f7   : > { %v1364_v50 = vmul.f32 %v1345_v46, %v1308_v44  ;;  %v1309_v51 = vmax.f32 %v1290_v45, 0.0  ;;  %v1292_v47 = vadd.f32 %v1291_v49, %v1189_v27  ;;  %v1385_v58 = vadd.f32 %v1384_v48, %v1363_v1 }
 0x3f8   : > { %v1293_v52 = vpop.f32.mrf.mxu1 }
 0x3f9   : > { %v1365_v54 = vmul.f32 %v1345_v46, %v1309_v51  ;;  %v1310_v55 = vmax.f32 %v1292_v47, 0.0  ;;  %v1294_v56 = vadd.f32 %v1293_v52, %v1189_v27  ;;  %v1373_v59 = vadd.f32 %v1372_v53, %v1364_v50 }
 0x3fb   : > { %v1366_v60 = vmul.f32 %v1350_v57, %v1310_v55  ;;  %v1311_v61 = vmax.f32 %v1294_v56, 0.0  ;;  %v1386_v62 = vadd.f32 %v1385_v58, %v1365_v54 }
 0x3fd   : > { %v1374_v8 = vadd.f32 %v1373_v59, %v1366_v60  ;;  %v1367_v14 = vmul.f32 %v1350_v57, %v1311_v61 }
 0x3ff   : > { %v1375_v17 = vrot.slane %v1374_v8, 4  ;;  %v1387_v19 = vadd.f32 %v1386_v62, %v1367_v14 }
 0x401   : > { %v1376_v11 = vadd.f32 %v1375_v17, %v1374_v8  ;;  %v1388_v20 = vrot.slane %v1387_v19, 4 }
 0x403   : > { %v1377_v6 = vrot.slane %v1376_v11, 2  ;;  %v1389_v16 = vadd.f32 %v1388_v20, %v1387_v19 }
 0x405   : > { %v1378_v21 = vadd.f32 %v1377_v6, %v1376_v11  ;;  %v1390_v4 = vrot.slane %v1389_v16, 2 }
 0x407   : > { %v1379_v22 = vrot.slane %v1378_v21, 1  ;;  %v1391_v23 = vadd.f32 %v1390_v4, %v1389_v16 }
 0x409   : > { %v1380_v5 = vadd.f32 %v1379_v22, %v1378_v21  ;;  %v1392_v15 = vrot.slane %v1391_v23, 1 }
 0x40b   : > { %v1393_v24 = vadd.f32 %v1392_v15, %v1391_v23  ;;  %v1399_v12 = vadd.f32 %v1397_v3, %v1380_v5 }
 0x40d   : > { %v1400_v25 = vadd.f32 %v1397_v3, %v1393_v24 }
 0x40f   : > { %v1403_v27 = vcombine.low %v1399_v12, %v1400_v25 }
 0x411   : > { %v1410_v28 = vrot.slane %v1403_v27, %v1409_v26 }
 0x413   : > { %v1417_v29 = vrot.slane %v1410_v28, %v1409_v26 }
 0x415   : > { %1423 = vst.msk [vmem:[%s315_s9] sm:$0x3] %vm1421_vm4, %v1417_v29 }
 0x416   : > { %1707 = shalt.err (!%p1704_p3)
}
 0x417   : > { %s1708_s23 = scalar_lea.hbm %s1437_s18, 32  ;;  %s1712_s26 = scalar_lea.hbm %s2223_s8, 64 }
 0x418   : > { %p1709_p4 = scmp.ne.s32.totalorder %s1437_s18, %s1708_s23  ;;  %p1713_p9 = scmp.lt.s32.totalorder %s1437_s18, %s2223_s8 }
 0x419   : > { %p1714_p10 = scmp.lt.s32.totalorder %s1712_s26, %s1708_s23 }
 0x41a   : > { %p1710_p7 = pnand %p1709_p4, %p1839_p5 }
 0x41b   : > { %p1715_p11 = por %p1714_p10, %p1713_p9 }
 0x41c   : > { %p1711_p8 = pneg %p1710_p7 }
 0x41e   : > { %p1716_p12 = pnand %p1715_p11, %p1711_p8 }
 0x420   : > { %1719 = shalt.err (!%p1716_p12)
}
 0x421   : > { %1633 = dma.vmem_to_hbm [thread:$0]  (%p1839_p5), %s1440_s13, 32, %s1437_s18, %s1425_s19  }
 0x422 PF: > { %p1639_p13 = scmp.ge.s32.totalorder %s1754_s30, 2  ;;  %s1451_s12 = sand.u32 1, %s1742_s27  }
 0x423   : > { %s1452_s21 = scalar_lea.sflag [#allocation3], %s1451_s12 }
 0x424   : > { %p1636_p0 = pnand %p1639_p13, %p1843_p6 }
 0x426   : > { %p1637_p1 = pneg %p1636_p0 }
 0x428   : > { %1737 = dma.done.wait (%p1637_p1), %s1452_s21, 32  }
 0x429   : > { %1739 = vsyncadd (%p1637_p1), %s1452_s21, 4294967264  ;;  %p18_p2 = scmp.ge.s32.totalorder %s1827_s11, 4   ;;  %s2226_s27 = smov %s1746_s28 }
 0x42a   : > { %s2227_s28 = smov %s1750_s29  ;;  %s2228_s29 = smov %s1837_s14 }
 0x42b   : > { %s2229_s30 = smov %s1827_s11  ;;  %20 = sbr.rel (!%p18_p2) target bundleno = 3 (0x3), region = 90 }
 0x430   :  { %1457 = vsyncpa [#allocation3], 1 }
 0x431   :  { %1459 = vsyncpa [#allocation3 + $0x1], 1 }

</bundles_post_ra>
